<compile_context>
chip_gen: v6e
topology: v6e:2x2x1
jax: 0.10.0
libtpu: 0.0.40
codegen_flags: <defaults>
</compile_context>

<pallas_src>
import jax
import jax.numpy as jnp
from jax import lax
from jax.experimental import pallas as pl
from jax.experimental.pallas import tpu as pltpu


def _select_gate_kernel(title_ref, ctx_ref, w_ref, out_ref):
    # title_ref: (B,)  f32 SMEM (scalar prefetch): per-batch title+bias term
    # ctx_ref:   (TL, 2H)  contexts row tile of batch b
    # w_ref:     (8, 2H)   Wc[:,0] - Wc[:,1], replicated over 8 sublanes
    # out_ref:   (2, TL)   [g0 ; g1], lane-dense output tile
    b = pl.program_id(0)
    # (8, 2H) x (TL, 2H) contracting on 2H -> (8, TL)   (trans-B dims; rows identical)
    d8 = lax.dot_general(
        w_ref[...], ctx_ref[...],
        dimension_numbers=(((1,), (1,)), ((), ())),
        preferred_element_type=jnp.float32)
    d = d8[0:1, :] + title_ref[b]                    # (1, TL), lane-dense, f32
    g0 = 0.5 * (jnp.tanh(0.5 * d) + 1.0)             # exact sigmoid, single EUP op
    out_ref[0:1, :] = g0.astype(out_ref.dtype)
    out_ref[1:2, :] = (1.0 - g0).astype(out_ref.dtype)


def _tpu_vmem_bytes():
    try:
        return int(pltpu.get_tpu_info().vmem_capacity_bytes)
    except Exception:
        return 64 * 1024 * 1024      # conservative: v7x per-TensorCore VMEM


def _choose_row_tile(L, B, feat_bytes, tile_target_bytes):
    rows_target = max(8, tile_target_bytes // max(feat_bytes, 1))
    if L <= rows_target:
        tl = L                                        # full-L tile (full-dim block)
    else:
        tl = max(128, (rows_target // 128) * 128)     # lane-aligned for the (2, TL) out block
        if tl >= L:
            tl = L
    # keep >= 2 grid steps when possible so both v7x TensorCores get work
    if B * ((L + tl - 1) // tl) < 2 and L >= 256:
        tl = max(128, ((L // 2) // 128) * 128)
    return tl


def select_gate(contexts, title_context, weight, bias):
    """contexts [B, L, 2H], title_context [B, 2H], weight [2, 4H] (torch
    nn.Linear layout), bias [2] -> softmax gates [B, L, 2]."""
    B, L, twoH = contexts.shape
    assert title_context.shape == (B, twoH)
    assert weight.shape == (2, 2 * twoH)
    assert bias.shape == (2,)

    w_c = weight[:, :twoH]                    # multiplies contexts
    w_t = weight[:, twoH:]                    # multiplies title_context

    # softmax([z0, z1]) == [sigmoid(z0 - z1), 1 - sigmoid(z0 - z1)]
    wc_diff = (w_c[0] - w_c[1]).astype(contexts.dtype)                 # (2H,)
    w_rep = jnp.broadcast_to(wc_diff[None, :], (8, twoH))              # (8, 2H)
    title_diff = (title_context.astype(jnp.float32)
                  @ (w_t[0] - w_t[1]).astype(jnp.float32)
                  + (bias[0] - bias[1]).astype(jnp.float32))           # (B,) f32

    # Generation-aware tile / VMEM budget (v5e/v6e: 128 MiB; v7x: 64 MiB).
    vmem_bytes = _tpu_vmem_bytes()
    big_vmem = vmem_bytes >= 96 * 1024 * 1024
    tile_target = (16 if big_vmem else 6) * 1024 * 1024   # contexts bytes per step
    vmem_limit = (96 if big_vmem else 48) * 1024 * 1024

    feat_bytes = twoH * contexts.dtype.itemsize
    tl = _choose_row_tile(L, B, feat_bytes, tile_target)
    num_l = pl.cdiv(L, tl)

    grid_spec = pltpu.PrefetchScalarGridSpec(
        num_scalar_prefetch=1,                           # title_diff -> SMEM
        grid=(B, num_l),
        in_specs=[
            pl.BlockSpec((None, tl, twoH), lambda b, l, t: (b, l, 0)),  # contexts tile
            pl.BlockSpec((8, twoH), lambda b, l, t: (0, 0)),            # w_rep (resident)
        ],
        out_specs=pl.BlockSpec((None, 2, tl), lambda b, l, t: (b, 0, l)),
    )

    itemsize = contexts.dtype.itemsize
    cost = pl.CostEstimate(
        flops=2 * B * L * twoH,
        transcendentals=B * L,
        bytes_accessed=B * L * twoH * itemsize + B * L * 2 * itemsize + B * 4,
    )

    out_t = pl.pallas_call(
        _select_gate_kernel,
        out_shape=jax.ShapeDtypeStruct((B, 2, L), contexts.dtype),
        grid_spec=grid_spec,
        compiler_params=pltpu.CompilerParams(
            dimension_semantics=("parallel", "parallel"),
            vmem_limit_bytes=vmem_limit,
        ),
        cost_estimate=cost,
    )(title_diff, contexts, w_rep)

    return jnp.swapaxes(out_t, 1, 2)                     # (B, L, 2)


def select_gate_ref(contexts, title_context, weight, bias):
    B, L, _ = contexts.shape
    title = jnp.broadcast_to(title_context[:, None, :],
                             (B, L, title_context.shape[-1]))
    x = jnp.concatenate([contexts, title], axis=-1)       # [B, L, 4H]
    logits = jnp.einsum("blk,ok->blo", x, weight) + bias
    return jax.nn.softmax(logits, axis=-1)


if __name__ == "__main__":
    # config.encoder_hidden_size = 16  ->  2H = 32, Linear in_features = 64
    H = 16
    B, L = 2, 8
    twoH = 2 * H

    key = jax.random.PRNGKey(0)
    k1, k2, k3, k4 = jax.random.split(key, 4)

    contexts = jax.random.normal(k1, (B, L, twoH), dtype=jnp.float32)
    title_context = jax.random.normal(k2, (B, twoH), dtype=jnp.float32)
    # nn.Linear(4H, 2): weight [2, 4H], bias [2] — deterministic synthetic init
    weight = jax.random.normal(k3, (2, 4 * H), dtype=jnp.float32) * 0.1
    bias = jax.random.normal(k4, (2,), dtype=jnp.float32) * 0.1

    gates = jax.block_until_ready(select_gate(contexts, title_context, weight, bias))
    expected = select_gate_ref(contexts, title_context, weight, bias)

    assert gates.shape == (B, L, 2)
    err = jnp.max(jnp.abs(gates - expected))
    assert jnp.allclose(gates, expected, atol=1e-5, rtol=1e-5), f"max abs err = {err}"
    print("KERNEL_OK")
</pallas_src>

<mosaic_0001>
module attributes {stable_mosaic.version = 11 : i64} {
  func.func @_select_gate_kernel(%arg0: i32, %arg1: i32, %arg2: memref<2xf32, #tpu.memory_space<smem>>, %arg3: memref<1x8x32xf32, #tpu.memory_space<vmem>>, %arg4: memref<8x32xf32, #tpu.memory_space<vmem>>, %arg5: memref<1x2x8xf32, #tpu.memory_space<vmem>>) attributes {dimension_semantics = [#tpu.dimension_semantics<parallel>, #tpu.dimension_semantics<parallel>], iteration_bounds = array<i64: 2, 1>, scalar_prefetch = 1 : i64, scratch_operands = 0 : i64, tpu.core_type = #tpu.core_type<tc>, window_params = [{transform_indices = @transform_0, window_bounds = array<i64: 1, 8, 32>}, {pipeline_mode = #tpu.pipeline_mode<synchronous>, transform_indices = @transform_1, window_bounds = array<i64: 8, 32>}, {transform_indices = @transform_2, window_bounds = array<i64: 1, 2, 8>}]} {
    %c0 = arith.constant 0 : index
    %c0_0 = arith.constant 0 : index
    %0 = vector.load %arg4[%c0, %c0_0] : memref<8x32xf32, #tpu.memory_space<vmem>>, vector<8x32xf32>
    %c0_1 = arith.constant 0 : index
    %c0_2 = arith.constant 0 : index
    %c0_3 = arith.constant 0 : index
    %1 = vector.load %arg3[%c0_1, %c0_2, %c0_3] : memref<1x8x32xf32, #tpu.memory_space<vmem>>, vector<1x8x32xf32>
    %2 = vector.shape_cast %1 : vector<1x8x32xf32> to vector<8x32xf32>
    %cst = arith.constant dense<0.000000e+00> : vector<8x8xf32>
    %3 = tpu.matmul %0, %2, %cst {dimension_numbers = #tpu.dot_dimension_numbers<[1], [1], [0], [0], [0, 0, 1, 0], [], []>} : vector<8x32xf32>, vector<8x32xf32>, vector<8x8xf32> -> vector<8x8xf32>
    %4 = vector.extract_strided_slice %3 {offsets = [0, 0], sizes = [1, 8], strides = [1, 1]} : vector<8x8xf32> to vector<1x8xf32>
    %5 = arith.index_cast %arg0 : i32 to index
    %6 = memref.load %arg2[%5] : memref<2xf32, #tpu.memory_space<smem>>
    %7 = vector.broadcast %6 : f32 to vector<1x8xf32>
    %8 = arith.addf %4, %7 : vector<1x8xf32>
    %cst_4 = arith.constant 5.000000e-01 : f32
    %9 = vector.broadcast %cst_4 : f32 to vector<1x8xf32>
    %10 = arith.mulf %9, %8 : vector<1x8xf32>
    %11 = math.tanh %10 : vector<1x8xf32>
    %cst_5 = arith.constant 1.000000e+00 : f32
    %12 = vector.broadcast %cst_5 : f32 to vector<1x8xf32>
    %13 = arith.addf %11, %12 : vector<1x8xf32>
    %cst_6 = arith.constant 5.000000e-01 : f32
    %14 = vector.broadcast %cst_6 : f32 to vector<1x8xf32>
    %15 = arith.mulf %14, %13 : vector<1x8xf32>
    %c0_7 = arith.constant 0 : index
    %c0_8 = arith.constant 0 : index
    %c0_9 = arith.constant 0 : index
    %16 = vector.load %arg5[%c0_7, %c0_8, %c0_9] : memref<1x2x8xf32, #tpu.memory_space<vmem>>, vector<1x1x8xf32>
    %17 = vector.shape_cast %16 : vector<1x1x8xf32> to vector<1x8xf32>
    %18 = vector.shape_cast %15 : vector<1x8xf32> to vector<1x1x8xf32>
    tpu.vector_store %arg5[%c0_7, %c0_8, %c0_9], %18 {strides = array<i32>} : memref<1x2x8xf32, #tpu.memory_space<vmem>>, vector<1x1x8xf32>,
    %cst_10 = arith.constant 1.000000e+00 : f32
    %19 = vector.broadcast %cst_10 : f32 to vector<1x8xf32>
    %20 = arith.subf %19, %15 : vector<1x8xf32>
    %c0_11 = arith.constant 0 : index
    %c1 = arith.constant 1 : index
    %c0_12 = arith.constant 0 : index
    %21 = vector.load %arg5[%c0_11, %c1, %c0_12] : memref<1x2x8xf32, #tpu.memory_space<vmem>>, vector<1x1x8xf32>
    %22 = vector.shape_cast %21 : vector<1x1x8xf32> to vector<1x8xf32>
    %23 = vector.shape_cast %20 : vector<1x8xf32> to vector<1x1x8xf32>
    tpu.vector_store %arg5[%c0_11, %c1, %c0_12], %23 {strides = array<i32>} : memref<1x2x8xf32, #tpu.memory_space<vmem>>, vector<1x1x8xf32>,
    return
  }
  func.func @transform_0(%arg0: i32, %arg1: i32, %arg2: memref<2xf32, #tpu.memory_space<smem>>) -> (i32, i32, i32) {
    %c0_i32 = arith.constant 0 : i32
    %c0_i32_0 = arith.constant 0 : i32
    return %arg0, %arg1, %c0_i32 : i32, i32, i32
  }
  func.func @transform_1(%arg0: i32, %arg1: i32, %arg2: memref<2xf32, #tpu.memory_space<smem>>) -> (i32, i32) {
    %c0_i32 = arith.constant 0 : i32
    %c0_i32_0 = arith.constant 0 : i32
    %c0_i32_1 = arith.constant 0 : i32
    return %c0_i32, %c0_i32_0 : i32, i32
  }
  func.func @transform_2(%arg0: i32, %arg1: i32, %arg2: memref<2xf32, #tpu.memory_space<smem>>) -> (i32, i32, i32) {
    %c0_i32 = arith.constant 0 : i32
    %c0_i32_0 = arith.constant 0 : i32
    return %arg0, %c0_i32, %arg1 : i32, i32, i32
  }
}

</mosaic_0001>

<bundles_post_ra>
// kernel: tpu_custom_call.1
= control target key start
LH: loop header
LB: loop body
LE: loop exit
PB: predicated region body
PF: predicated region fallthrough
CT: control target
= control target key end

     0   :  { %s641_s12 = smov [#allocation3]   ;;  %s833_s0 = inlined_call_operand.hbm [shape: f32[2], index: 0, kind: input, shape index: {}]   ;;  %s834_s1 = inlined_call_operand.hbm [shape: f32[2,8,32], index: 1, kind: input, shape index: {}]   ;;  %s835_s2 = inlined_call_operand.hbm [shape: f32[8,32], index: 2, kind: input, shape index: {}]   ;;  %s836_s3 = inlined_call_operand.hbm [shape: f32[2,2,8], index: 3, kind: output, shape index: {}]  }
   0x1   :  { %9 = dma.hbm_to_smem %s833_s0, 16, %s641_s12, [#allocation2] }
   0x2   :  { %603 = dma.done.wait [#allocation2], 16 }
   0x3   :  { %604 = vsyncadd [#allocation2], 4294967280 }
   0x4   :  { %11 = sfence }
   0x5   :  { %12 = vsyncpa [#allocation5], 0 }
   0x6   :  { %14 = vsyncpa [#allocation5 + $0x1], 0 }
   0x7   :  { %15 = vsyncpa [#allocation8], 0 }
   0x8   :  { %16 = vsyncpa [#allocation6], 0 }
   0x9   :  { %18 = vsyncpa [#allocation6 + $0x1], 0  ;;  %s670_s15 = smov 0   ;;  %s672_s16 = smov 0  }
   0xa   :  { %s674_s17 = smov 0   ;;  %s676_s18 = smov 0  }
   0xb   :  { %s678_s19 = smov 0   ;;  %s680_s20 = smov 0  }
   0xc LB: > { %s389_s0 = sadd.s32 4294967295, %s639_s20   ;;  %s390_s21 = sadd.s32 4294967294, %s639_s20   ;;  %s639_s20 = sphi %s680_s20, %s24_s20   ;;  %s635_s19 = sphi %s678_s19, %s853_s19   ;;  %s631_s18 = sphi %s676_s18, %s852_s18   ;;  %s627_s17 = sphi %s674_s17, %s851_s17   ;;  %s623_s16 = sphi %s672_s16, %s850_s16   ;;  %s619_s15 = sphi %s670_s15, %s849_s15  }
   0xd   : > { %p58_p0 = scmp.ne.s32.totalorder %s623_s16, %s619_s15  ;;  %p704_p1 = scmp.eq.s32.totalorder %s389_s0, 0 }
   0xe   : > { %p708_p2 = scmp.eq.s32.totalorder %s389_s0, 1  ;;  %p111_p3 = scmp.eq.s32.totalorder %s390_s21, 1 }
   0xf   : > { %p714_p4 = por %p704_p1, %p58_p0  ;;  %p391_p5 = scmp.ge.s32.totalorder %s639_s20, 1 }
  0x10   : > { %p719_p6 = por %p111_p3, %p58_p0  ;;  %p118_p7 = scmp.lt.s32.totalorder %s639_s20, 3 }
  0x11   : > { %s840_s24 = scalar_select %p714_p4, 1, 0 }
  0x12   : > { %s841_s25 = scalar_select %p719_p6, 1, 0 }
  0x13   : > { %p724_p8 = pnand %p391_p5, %p118_p7  ;;  %s642_s27 = smov [#allocation7]  }
  0x14   : > { %s131_s28 = sshll.u32 %s642_s27, 4  ;;  %s36_s30 = sadd.s32 1, %s635_s19  ;;  %s132_s28 = int_to_ptr.vmem [resolvable:$true] %s131_s28 }
  0x15   : > { %p421_p10 = pneg %p724_p8  ;;  %s45_s4 = sadd.s32 1, %s627_s17 }
  0x16   : > { %p38_p12 = scmp.ge.s32.totalorder %s36_s30, 2  ;;  %s510_s5 = scalar_lea.vmem %s132_s28, 128 }
  0x17   : > { %p733_p11 = pnand %p421_p10, %p704_p1  ;;  %p511_p0 = scmp.ne.s32.totalorder %s132_s28, %s510_s5 }
  0x18   : > { %p518_p7 = scmp.lt.s32.totalorder %s132_s28, %s132_s28  ;;  %p519_p6 = scmp.lt.s32.totalorder %s510_s5, %s510_s5 }
  0x19   : > { %p501_p13 = pneg %p733_p11 }
  0x1a   : > { %p520_p9 = por %p519_p6, %p518_p7 }
  0x1b   : > { %p513_p3 = pnand %p511_p0, %p501_p13 }
  0x1d   : > { %p514_p5 = pneg %p513_p3 }
  0x1f   : > { %p521_p4 = pnand %p520_p9, %p514_p5 }
  0x21   : > { %524 = shalt.err (!%p521_p4)
}
  0x22   : > { %424 = dma.hbm_to_vmem [thread:$0]  (!%p733_p11), %s835_s2, 128, %s132_s28, [#allocation8]  }
  0x23   : > { %s855_s30 = smov (%p38_p12, %s36_s30), 0  ;;  %p52_p6 = scmp.ne.s32.totalorder %s627_s17, %s623_s16 }
  0x24   : > { %p53_p4 = scmp.eq.s32.totalorder %s639_s20, 0  ;;  %s40_s8 = ssub.s32 %s635_s19, %s855_s30 }
  0x25   : > { %p434_p9 = scmp.lt.s32.totalorder %s639_s20, 2  ;;  %p43_p10 = scmp.eq.s32.totalorder %s40_s8, 0 }
  0x26   : > { %p54_p13 = por %p53_p4, %p52_p6  ;;  %p756_p0 = por %p708_p2, %p52_p6 }
  0x27   : > { %s142_s10 = sand.u32 1, %s627_s17   ;;  %s395_s13 = sshll.u32 %s635_s19, 7 }
  0x28   : > { %s762_s11 = scalar_select %p43_p10, %s627_s17, %s45_s4  }
  0x29   : > { %s394_s12 = sshll.u32 %s142_s10, 3  ;;  %s152_s21 = scalar_lea.hbm %s834_s1, %s395_s13 }
  0x2a   : > { %s146_s27 = scalar_lea.vmem [#allocation4], %s394_s12  ;;  %p768_p11 = pnand %p434_p9, %p54_p13 }
  0x2b   : > { %s154_s28 = sshll.u32 %s146_s27, 4  ;;  %s143_s23 = scalar_lea.sflag [#allocation5], %s142_s10  ;;  %s155_s28 = int_to_ptr.vmem [resolvable:$true] %s154_s28 }
  0x2c   : > { %p527_p2 = pneg %p768_p11  ;;  %s538_s5 = scalar_lea.vmem %s155_s28, 128 }
  0x2d   : > { %p539_p12 = scmp.ne.s32.totalorder %s155_s28, %s538_s5  ;;  %s643_s4 = smov [#allocation4]  }
  0x2e   : > { %s543_s6 = sshll.u32 %s643_s4, 4  ;;  %s544_s6 = int_to_ptr.vmem [resolvable:$false] %s543_s6 }
  0x2f   : > { %p541_p3 = pnand %p539_p12, %p527_p2  ;;  %s545_s7 = scalar_lea.vmem %s544_s6, 256 }
  0x30   : > { %p546_p7 = scmp.lt.s32.totalorder %s155_s28, %s544_s6  ;;  %p547_p6 = scmp.lt.s32.totalorder %s545_s7, %s538_s5 }
  0x31   : > { %p542_p5 = pneg %p541_p3 }
  0x32   : > { %p548_p4 = por %p547_p6, %p546_p7 }
  0x34   : > { %p549_p10 = pnand %p548_p4, %p542_p5 }
  0x36   : > { %552 = shalt.err (!%p549_p10)
}
  0x37   : > { %428 = dma.hbm_to_vmem [thread:$0]  (!%p768_p11), %s152_s21, 128, %s155_s28, %s143_s23  }
  0x38   : > { %163 = sbr.rel (%p724_p8) target bundleno = 299 (0x12b), region = 28  ;;  %s779_s8 = sand.u32 (!%p724_p8), 1, %s623_s16  }
  0x39   : > { %s397_s10 = sshll.u32 (!%p724_p8), %s779_s8, 3  ;;  %s166_s12 = scalar_lea.sflag (!%p724_p8), [#allocation5], %s779_s8 }
  0x3a   : > { %s169_s13 = scalar_lea.vmem (!%p724_p8), [#allocation4], %s397_s10  ;;  %p846_p9 = scmp.ne.s32.totalorder (!%p724_p8), %s840_s24, 0 }
  0x3d   : > { %606 = dma.done.wait (%p846_p9), %s166_s12, 128  }
  0x3e   : > { %608 = vsyncadd (%p846_p9), %s166_s12, 4294967168 }
  0x3f   : > { %610 = dma.done.wait (%p704_p1), [#allocation8], 128  }
  0x40   : > { %612 = vsyncadd (%p704_p1), [#allocation8], 4294967168  ;;  %v644_v0 = vmov 0.0   ;;  %vm645_vm0 = vmmov 0   ;;  %vm196_vm1 = vcmask 261120   ;;  %v195_v1 = vld [vmem:[%s169_s13] sm:$0xff] }
  0x41   : > { %408 = vmatprep.subr.mxu0 %v644_v0  ;;  %410 = vmatprep.mubr.msk.f32.mxu0 %vm645_vm0, %v644_v0  ;;  %v194_v2 = vld [vmem:[#allocation7] sm:$0xff]  ;;  %s273_s24 = sld [smem:[#allocation3 + %s631_s18]]  ;;  %s399_s22 = sshll.u32 %s779_s8, 1  ;;  %vm280_vm2 = vcmask 57344  }
  0x42   : > { %409 = vmatpush3.xpose.msk.msra.mxu0 %vm196_vm1, %v195_v1  ;;  %s403_s26 = sshll.u32 %s631_s18, 5  ;;  %s193_s14 = scalar_lea.vmem [#allocation9], %s399_s22 }
  0x43   : > { %s299_s0 = sshll.u32 %s193_s14, 4  ;;  %s297_s28 = scalar_lea.hbm %s836_s3, %s403_s26  ;;  %s300_s0 = int_to_ptr.vmem [resolvable:$true] %s299_s0 }
  0x44   : > { %s285_s29 = scalar_lea.sflag [#allocation6], %s779_s8  ;;  %s553_s23 = scalar_lea.vmem %s300_s0, 32 }
  0x45   : > { %411 = vmatmul.mubr.msk.f32.vlgmr.msra.gmra.mxu0 %vm196_vm1, %v194_v2  ;;  %p554_p1 = scmp.ne.s32.totalorder %s300_s0, %s553_s23  ;;  %s646_s5 = smov [#allocation9]  }
  0x46   : > { %s557_s4 = sshll.u32 %s646_s5, 4  ;;  %s558_s4 = int_to_ptr.vmem [resolvable:$false] %s557_s4 }
  0x47   : > { %v274_v3 = vstv %s273_s24  ;;  %p555_p8 = pnand %p554_p1, %p756_p0  ;;  %s559_s18 = scalar_lea.vmem %s558_s4, 64 }
  0x48   : > { %p560_p11 = scmp.lt.s32.totalorder %s300_s0, %s558_s4  ;;  %p561_p2 = scmp.lt.s32.totalorder %s559_s18, %s553_s23 }
  0x49   : > { %p556_p13 = pneg %p555_p8 }
  0x4a   : > { %p562_p12 = por %p561_p2, %p560_p11 }
  0x4c   : > { %p563_p3 = pnand %p562_p12, %p556_p13 }
 0x105   : > { %v269_v4 = vpop.f32.mrf.mxu0 }
 0x106   : > { %v275_v5 = vadd.f32 %v274_v3, %v269_v4 }
 0x107   : > { %v412_v6 = vpop.f32.mrf.mxu0 }
 0x108   : > { %v276_v7 = vmul.f32 0.5, %v275_v5 }
 0x10a   : > { %489 = vtanh.f32 %v276_v7 }
 0x117   : > { %v490_v8 = vpop.eup %489 }
 0x118   : > { %v278_v9 = vadd.f32 1.0, %v490_v8 }
 0x11a   : > { %v279_v10 = vmul.f32 0.5, %v278_v9 }
 0x11c   : > { %v282_v11 = vsub.f32 1.0, %v279_v10  ;;  %281 = vst.msk [vmem:[%s193_s14] sm:$0x1] %vm280_vm2, %v279_v10 }
 0x11e   : > { %283 = vst.msk [vmem:[%s193_s14 + $0x1] sm:$0x1] %vm280_vm2, %v282_v11 }
 0x11f   : > { %566 = shalt.err (!%p563_p3)
}
 0x120   : > { %s567_s6 = scalar_lea.hbm %s297_s28, 32  ;;  %s571_s10 = scalar_lea.hbm %s836_s3, 64 }
 0x121   : > { %p568_p5 = scmp.ne.s32.totalorder %s297_s28, %s567_s6  ;;  %p572_p4 = scmp.lt.s32.totalorder %s297_s28, %s836_s3 }
 0x122   : > { %p573_p10 = scmp.lt.s32.totalorder %s571_s10, %s567_s6 }
 0x123   : > { %p569_p7 = pnand %p568_p5, %p756_p0 }
 0x124   : > { %p574_p9 = por %p573_p10, %p572_p4 }
 0x125   : > { %p570_p6 = pneg %p569_p7 }
 0x127   : > { %p575_p1 = pnand %p574_p9, %p570_p6 }
 0x129   : > { %578 = shalt.err (!%p575_p1)
}
 0x12a   : > { %419 = dma.vmem_to_hbm [thread:$0]  (%p756_p0), %s300_s0, 32, %s297_s28, %s285_s29  }
 0x12b PF: > { %s311_s24 = sand.u32 1, %s619_s15   ;;  %p847_p8 = scmp.ne.s32.totalorder %s841_s25, 0 }
 0x12c   : > { %p848_p13 = scmp.ge.s32.totalorder %s639_s20, 2  ;;  %s312_s22 = scalar_lea.sflag [#allocation6], %s311_s24 }
 0x12e   : > { %p430_p11 = pnand %p848_p13, %p847_p8 }
 0x130   : > { %p431_p2 = pneg %p430_p11 }
 0x132   : > { %614 = dma.done.wait (%p431_p2), %s312_s22, 32  }
 0x133   : > { %616 = vsyncadd (%p431_p2), %s312_s22, 4294967264  ;;  %s24_s20 = sadd.s32 1, %s639_s20   ;;  %s849_s15 = smov %s623_s16 }
 0x134   : > { %p21_p12 = scmp.ge.s32.totalorder %s24_s20, 4   ;;  %s850_s16 = smov %s627_s17 }
 0x135   : > { %s851_s17 = smov %s762_s11  ;;  %s852_s18 = smov %s635_s19 }
 0x136   : > { %s853_s19 = smov %s855_s30  ;;  %23 = sbr.rel (!%p21_p12) target bundleno = 12 (0xc), region = 77 }
 0x13b   :  { %317 = vsyncpa [#allocation5], 1 }
 0x13c   :  { %319 = vsyncpa [#allocation5 + $0x1], 1 }
 0x13d   :  { %320 = vsyncpa [#allocation8], 1 }
 0x13e   :  { %321 = vsyncpa [#allocation6], 1 }
 0x13f   :  { %323 = vsyncpa [#allocation6 + $0x1], 1 }

</bundles_post_ra>
